<compile_context>
chip_gen: v7x
topology: tpu7x:2x2x1
jax: 0.10.0
libtpu: 0.0.40
codegen_flags: <defaults>
</compile_context>

<pallas_src>
import math

import jax
import jax.numpy as jnp
from jax.experimental import pallas as pl
from jax.experimental.pallas import tpu as pltpu


def _affine_kernel(x_ref, w_ref, b_ref, o_ref):
    # x_ref: (tm, ts).  w_ref/b_ref: (tm, 1) or (1, ts) f32 -> broadcast.
    x = x_ref[...].astype(jnp.float32)
    o_ref[...] = (x * w_ref[...] + b_ref[...]).astype(o_ref.dtype)


def _round_down(v, m):
    return (v // m) * m


def _auto_block_bytes():
    """Per-step byte budget for ONE x block (input dtype bytes)."""
    try:
        info = pltpu.get_tpu_info()
        vmem = int(getattr(info, "vmem_capacity_bytes", 64 << 20))
    except Exception:  # pragma: no cover - conservative fallback off-TPU
        vmem = 64 << 20
    # Double-buffered in + out ~= 4x one block; keep that comfortably under
    # physical VMEM (v7x: 64 MiB -> ~5.3 MiB blocks; v5e/v6e: capped at 8 MiB).
    return max(2 << 20, min(8 << 20, vmem // 12))


def _pick_tiles(M, L, in_itemsize, out_itemsize, block_bytes,
                *, max_tm=1024, max_ts=2048):
    """Pick (tm, ts) for an (M, L) elementwise pass.

    Grow the lane axis first (full unmasked 128-lane stores; the tiny param
    block stays resident across the lane grid axis), then fill the per-block
    byte budget with rows.
    """
    # Lane (last) dim: multiple of 128, or the full extent when small.
    if L < 128:
        ts = L
    else:
        ts = max(128, min(max_ts, _round_down(L, 128)))

    # Sublane (second-minor) dim: multiple of 8 (16 for 2-byte, 32 for 1-byte
    # packed dtypes), or the full extent when tiny.
    min_item = max(1, min(in_itemsize, out_itemsize))
    row_align = 8 * max(1, 4 // min_item)
    if M < 8:
        tm = M
    else:
        cap = min(M, max_tm)
        want = max(8, block_bytes // max(1, ts * in_itemsize))
        tm = min(cap, want)
        a = row_align if tm >= row_align else 8
        tm = max(8, _round_down(tm, a))
    return tm, ts


def norm_forward(x, weight, bias, *, block_bytes=None):
    """Per-channel affine on an (N, C, *spatial) input (PyTorch `_norm.forward`)."""
    assert x.ndim >= 2, "_norm expects a channel axis at dim 1"
    N, C = x.shape[0], x.shape[1]
    assert weight.shape == (C,) and bias.shape == (C,)
    spatial = x.shape[2:]
    S = math.prod(spatial) if spatial else 1

    # Matches jnp/PyTorch type promotion (e.g. bf16 x with f32 params -> f32).
    # If bandwidth matters more than promotion semantics, pass bf16 params or
    # cast the result; compute inside the kernel is f32 either way.
    out_dtype = jnp.result_type(x.dtype, weight.dtype, bias.dtype)

    if x.size == 0:  # empty batch / channel / spatial dim
        return jnp.zeros(x.shape, dtype=out_dtype)

    w32 = weight.astype(jnp.float32)
    b32 = bias.astype(jnp.float32)

    if S >= 128:
        # Native NCHW view: each (n, c) spatial block is contiguous, so the
        # (N*C, S) reshape is free.  Params become per-row columns.
        M_rows, L = N * C, S
        x2d = x.reshape(M_rows, L)
        w_arr = jnp.broadcast_to(w32[None, :], (N, C)).reshape(M_rows, 1)
        b_arr = jnp.broadcast_to(b32[None, :], (N, C)).reshape(M_rows, 1)
        per_row = True
    else:
        # Small / no spatial extent: fold C (and S) into the lane axis so the
        # output stays lane-dense instead of emitting <128-wide masked stores.
        M_rows, L = N, C * S
        x2d = x.reshape(M_rows, L)
        w_arr = jnp.broadcast_to(w32[:, None], (C, max(S, 1))).reshape(1, L)
        b_arr = jnp.broadcast_to(b32[:, None], (C, max(S, 1))).reshape(1, L)
        per_row = False

    in_itemsize = jnp.dtype(x.dtype).itemsize
    out_itemsize = jnp.dtype(out_dtype).itemsize
    if block_bytes is None:
        block_bytes = _auto_block_bytes()

    tm, ts = _pick_tiles(M_rows, L, in_itemsize, out_itemsize, block_bytes)

    grid = (pl.cdiv(M_rows, tm), pl.cdiv(L, ts))

    x_spec = pl.BlockSpec((tm, ts), lambda i, j: (i, j))
    o_spec = pl.BlockSpec((tm, ts), lambda i, j: (i, j))
    if per_row:
        w_spec = pl.BlockSpec((tm, 1), lambda i, j: (i, 0))
        b_spec = pl.BlockSpec((tm, 1), lambda i, j: (i, 0))
        param_bytes = tm * 4
    else:
        w_spec = pl.BlockSpec((1, ts), lambda i, j: (0, j))
        b_spec = pl.BlockSpec((1, ts), lambda i, j: (0, j))
        param_bytes = ts * 4

    # Pallas double-buffers every input and output block.
    need = 2 * tm * ts * (in_itemsize + out_itemsize) + 4 * param_bytes + (2 << 20)
    compiler_kwargs = dict(dimension_semantics=("parallel", "parallel"))
    if need > (16 << 20):
        # Raise the scoped-VMEM limit (defaults: 16 MiB v5e, 32 MiB v6e/v7x);
        # cap leaves headroom under v7x's 64 MiB physical VMEM.
        compiler_kwargs["vmem_limit_bytes"] = int(min(need + need // 4, 48 << 20))

    out2d = pl.pallas_call(
        _affine_kernel,
        out_shape=jax.ShapeDtypeStruct((M_rows, L), out_dtype),
        grid_spec=pltpu.PrefetchScalarGridSpec(
            num_scalar_prefetch=0,
            grid=grid,
            in_specs=[x_spec, w_spec, b_spec],
            out_specs=o_spec,
        ),
        compiler_params=pltpu.CompilerParams(**compiler_kwargs),
    )(x2d, w_arr, b_arr)

    return out2d.reshape(x.shape)


if __name__ == "__main__":
    key = jax.random.PRNGKey(0)
    kx, kx1, _ = jax.random.split(key, 3)

    # Primary shape: N=2, C=4, H=W=16 (S=256 -> native per-row path).
    N, C, H, W = 2, 4, 16, 16
    x = jax.random.normal(kx, (N, C, H, W), dtype=jnp.float32)

    # Deterministic parameters mirroring _norm._set_parameters (ones/zeros),
    # plus a small perturbation so the affine is non-trivial.
    weight = jnp.ones((C,), dtype=jnp.float32) + 0.1 * jnp.arange(C, dtype=jnp.float32)
    bias = jnp.zeros((C,), dtype=jnp.float32) + 0.01 * jnp.arange(C, dtype=jnp.float32)

    out = jax.block_until_ready(norm_forward(x, weight, bias))
    ref = x * weight.reshape(1, C, 1, 1) + bias.reshape(1, C, 1, 1)
    assert out.shape == ref.shape and out.dtype == ref.dtype
    assert jnp.allclose(out, ref, atol=1e-6, rtol=1e-6)

    # Small-spatial shape (S < 128 -> lane-folded path), BatchNorm1d-style.
    x1 = jax.random.normal(kx1, (2, C, 8), dtype=jnp.float32)
    out1 = jax.block_until_ready(norm_forward(x1, weight, bias))
    ref1 = x1 * weight.reshape(1, C, 1) + bias.reshape(1, C, 1)
    assert out1.shape == ref1.shape and jnp.allclose(out1, ref1, atol=1e-6, rtol=1e-6)

    print("KERNEL_OK")
</pallas_src>

<mosaic_0001>
module attributes {stable_mosaic.version = 11 : i64} {
  func.func @_affine_kernel(%arg0: i32, %arg1: i32, %arg2: memref<8x256xf32, #tpu.memory_space<vmem>>, %arg3: memref<8x1xf32, #tpu.memory_space<vmem>>, %arg4: memref<8x1xf32, #tpu.memory_space<vmem>>, %arg5: memref<8x256xf32, #tpu.memory_space<vmem>>) attributes {dimension_semantics = [#tpu.dimension_semantics<parallel>, #tpu.dimension_semantics<parallel>], iteration_bounds = array<i64: 1, 1>, scalar_prefetch = 0 : i64, scratch_operands = 0 : i64, tpu.core_type = #tpu.core_type<tc>, window_params = [{transform_indices = @transform_0, window_bounds = array<i64: 8, 256>}, {transform_indices = @transform_1, window_bounds = array<i64: 8, 1>}, {transform_indices = @transform_2, window_bounds = array<i64: 8, 1>}, {transform_indices = @transform_3, window_bounds = array<i64: 8, 256>}]} {
    %c0 = arith.constant 0 : index
    %c0_0 = arith.constant 0 : index
    %0 = vector.load %arg2[%c0, %c0_0] : memref<8x256xf32, #tpu.memory_space<vmem>>, vector<8x256xf32>
    %c0_1 = arith.constant 0 : index
    %c0_2 = arith.constant 0 : index
    %1 = vector.load %arg3[%c0_1, %c0_2] : memref<8x1xf32, #tpu.memory_space<vmem>>, vector<8x1xf32>
    %2 = vector.broadcast %1 : vector<8x1xf32> to vector<8x256xf32>
    %3 = arith.mulf %0, %2 : vector<8x256xf32>
    %c0_3 = arith.constant 0 : index
    %c0_4 = arith.constant 0 : index
    %4 = vector.load %arg4[%c0_3, %c0_4] : memref<8x1xf32, #tpu.memory_space<vmem>>, vector<8x1xf32>
    %5 = vector.broadcast %4 : vector<8x1xf32> to vector<8x256xf32>
    %6 = arith.addf %3, %5 : vector<8x256xf32>
    %c0_5 = arith.constant 0 : index
    %c0_6 = arith.constant 0 : index
    %7 = vector.load %arg5[%c0_5, %c0_6] : memref<8x256xf32, #tpu.memory_space<vmem>>, vector<8x256xf32>
    tpu.vector_store %arg5[%c0_5, %c0_6], %6 {strides = array<i32>} : memref<8x256xf32, #tpu.memory_space<vmem>>, vector<8x256xf32>,
    return
  }
  func.func @transform_0(%arg0: i32, %arg1: i32) -> (i32, i32) {
    %c0_i32 = arith.constant 0 : i32
    return %arg0, %arg1 : i32, i32
  }
  func.func @transform_1(%arg0: i32, %arg1: i32) -> (i32, i32) {
    %c0_i32 = arith.constant 0 : i32
    %c0_i32_0 = arith.constant 0 : i32
    return %arg0, %c0_i32 : i32, i32
  }
  func.func @transform_2(%arg0: i32, %arg1: i32) -> (i32, i32) {
    %c0_i32 = arith.constant 0 : i32
    %c0_i32_0 = arith.constant 0 : i32
    return %arg0, %c0_i32 : i32, i32
  }
  func.func @transform_3(%arg0: i32, %arg1: i32) -> (i32, i32) {
    %c0_i32 = arith.constant 0 : i32
    return %arg0, %arg1 : i32, i32
  }
}

</mosaic_0001>

<bundles_post_ra>
// kernel: tpu_custom_call.1
= control target key start
LH: loop header
LB: loop body
LE: loop exit
PB: predicated region body
PF: predicated region fallthrough
CT: control target
= control target key end

     0   :  { %s122_s0 = inlined_call_operand.vmem [shape: f32[8,256], index: 0, kind: input, shape index: {}]   ;;  %s123_s1 = inlined_call_operand.vmem [shape: f32[8,1], index: 1, kind: input, shape index: {}]   ;;  %s124_s2 = inlined_call_operand.vmem [shape: f32[8,1], index: 2, kind: input, shape index: {}]   ;;  %s125_s3 = inlined_call_operand.hbm [shape: f32[8,256], index: 3, kind: output, shape index: {}]  }
   0x1   :  { %v17_v0 = vld [vmem:[%s123_s1] sm:$0xff] }
   0x2   :  { %8 = vsyncpa [#allocation3], 0  ;;  %v76_v1 = vmov 0   ;;  %v25_v2 = vld [vmem:[%s124_s2] sm:$0xff]  ;;  %v16_v5 = vld [vmem:[%s122_s0 + $0x8] sm:$0xff]  ;;  %s77_s20 = smov [#allocation2]  }
   0x3   :  { %51 = vset.pattern.permute.xlu0 %v76_v1  ;;  %v15_v4 = vld [vmem:[%s122_s0] sm:$0xff]  ;;  %s41_s1 = sshll.u32 %s77_s20, 4  ;;  %s42_s1 = int_to_ptr.vmem [resolvable:$true] %s41_s1 }
   0x4   :  { %20 = vperm.xlu0 %51, %v17_v0   ;;  %s52_s2 = scalar_lea.vmem %s42_s1, 256  ;;  %p57_p1 = scmp.lt.s32.totalorder %s42_s1, %s42_s1 }
   0x5   :  { %p53_p0 = scmp.ne.s32.totalorder %s42_s1, %s52_s2  ;;  %p58_p2 = scmp.lt.s32.totalorder %s52_s2, %s52_s2 }
   0x7   :  { %p59_p3 = por %p58_p2, %p57_p1 }
   0x8   :  { %28 = vperm.xlu0 %51, %v25_v2  }
   0x9   :  { %p60_p4 = pnand %p59_p3, %p53_p0 }
  0x83   :  { %v21_v3 = vpop.permute.xlu0 %20 }
  0x84   :  { %v23_v6 = vmul.f32 %v21_v3, %v15_v4  ;;  %v24_v7 = vmul.f32 %v21_v3, %v16_v5 }
  0x87   :  { %v29_v8 = vpop.permute.xlu0 %28 }
  0x88   :  { %v31_v9 = vadd.f32 %v29_v8, %v23_v6  ;;  %v32_v10 = vadd.f32 %v29_v8, %v24_v7 }
  0x8a   :  { %33 = vst [vmem:[#allocation2] sm:$0xff] %v31_v9  ;;  %34 = vst [vmem:[#allocation2 + $0x8] sm:$0xff] %v32_v10 }
  0x8b   :  { %63 = shalt.err (!%p60_p4)
}
  0x8c   :  { %s64_s0 = scalar_lea.hbm %s125_s3, 256 }
  0x8d   :  { %p65_p5 = scmp.ne.s32.totalorder %s125_s3, %s64_s0  ;;  %p68_p6 = scmp.lt.u32.totalorder %s64_s0, %s125_s3 }
  0x8f   :  { %p70_p7 = pnand %p68_p6, %p65_p5 }
  0x91   :  { %73 = shalt.err (!%p70_p7)
}
  0x92   :  { %44 = dma.vmem_to_hbm [thread:$0]  %s42_s1, 256, %s125_s3, [#allocation3]  }
  0x93   :  { %74 = dma.done.wait [#allocation3], 256  }
  0x94   :  { %75 = vsyncadd [#allocation3], 4294967040 }
  0x95   :  { %48 = vsyncpa [#allocation3], 1 }

</bundles_post_ra>
